<compile_context>
chip_gen: v6e
topology: v6e:2x2x1
jax: 0.10.0
libtpu: 0.0.40
codegen_flags: <defaults>
</compile_context>

<pallas_src>
import math
import numpy as np
import jax
import jax.numpy as jnp
from jax.experimental import pallas as pl
from jax.experimental.pallas import tpu as pltpu


# ----------------------------------------------------------------------------
# Sinusoidal table, identical math to the PyTorch __init__.
# Returns (d_model, max_len): the (1, d_model, max_len) buffer with the batch
# dim squeezed (pe_jax[c, t] == pe_torch[0, c, t]).
# ----------------------------------------------------------------------------
def _build_pe(d_model: int, max_len: int = 5000) -> jnp.ndarray:
    position = np.arange(0, max_len, dtype=np.float32)[:, None]            # (L, 1)
    div_term = np.exp(np.arange(0, d_model, 2, dtype=np.float32)
                      * (-math.log(10000.0) / d_model))                    # (d/2,)
    ang = position * div_term                                              # (L, d/2)
    pe = np.zeros((max_len, d_model), dtype=np.float32)
    pe[:, 0::2] = np.sin(ang)
    pe[:, 1::2] = np.cos(ang)
    return jnp.asarray(pe.T)                                               # (d, L)


def _pe_add_kernel(x_ref, pe_ref, o_ref):
    # 2-D path: (RB, TN) + (RB, TN).  3-D path: (BB, C, TN) + (C, TN) broadcasts.
    o_ref[...] = x_ref[...] + pe_ref[...]


def _choose_tile(total: int, unit: int, cap: int) -> int:
    """Largest multiple of `unit` that divides `total` and is <= cap.

    Falls back to `total` (full extent, always a legal block) when `unit`
    does not divide `total`.
    """
    if total % unit != 0:
        return total
    best = unit
    t = unit
    while t <= min(total, cap):
        if total % t == 0:
            best = t
        t += unit
    return best


def _budgets():
    """(vmem_limit_bytes, target_tile_bytes), generation-aware with safe fallback."""
    try:
        vmem_cap = int(pltpu.get_tpu_info().vmem_capacity_bytes)
    except Exception:
        vmem_cap = 0
    if vmem_cap >= (96 << 20):          # v5e / v6e: 128 MiB physical VMEM
        return 64 << 20, 8 << 20
    # v7x (64 MiB) or unknown: conservative.  6x tile double-buffered <= 24 MiB.
    return 32 << 20, 4 << 20


class TemporalPositionalEncoding:
    """Pallas-TPU forward of the PyTorch module (dropout = identity / eval)."""

    def __init__(self, d_model: int, dropout: float = 0.1, max_len: int = 5000):
        self.d_model = d_model
        self.dropout_p = dropout            # unused in eval mode
        self.pe = _build_pe(d_model, max_len)          # (d_model, max_len), f32
        self._pe_cache = {}                 # (N, N_pad, dtype, rows) -> array

    # Cached slice + cast + pad + replicate of the pe buffer.
    def _pe_block(self, N: int, N_pad: int, dt, rows: int) -> jnp.ndarray:
        key = (N, N_pad, jnp.dtype(dt).name, rows)
        blk = self._pe_cache.get(key)
        if blk is None:
            blk = self.pe[:, :N].astype(dt)                       # (C, N)
            if N_pad > N:
                blk = jnp.pad(blk, ((0, 0), (0, N_pad - N)))      # (C, N_pad)
            if rows > blk.shape[0]:
                blk = jnp.tile(blk, (rows // blk.shape[0], 1))    # (rows, N_pad)
            blk = jax.block_until_ready(blk)
            self._pe_cache[key] = blk
        return blk

    def __call__(self, x: jnp.ndarray) -> jnp.ndarray:
        assert x.ndim >= 3, 'x requires at least 3 dims! (B, C, ..)'
        old_shape = x.shape
        B, C = x.shape[0], x.shape[1]
        assert C == self.d_model, 'channel dim must equal d_model'
        xr3 = x.reshape((B, C, -1))
        N = xr3.shape[-1]
        dt = x.dtype
        itemsize = jnp.dtype(dt).itemsize
        pack = max(8, 32 // itemsize)        # sublane packing: 8 f32 / 16 bf16 / 32 i8

        vmem_limit, target = _budgets()
        cparams = pltpu.CompilerParams(
            dimension_semantics=("parallel", "parallel"),
            vmem_limit_bytes=vmem_limit)

        # Lane-dense last dim: pad N up to a multiple of 128.
        N_pad = ((N + 127) // 128) * 128
        pad = N_pad - N

        R = B * C
        row_unit = math.lcm(C, pack)

        if R % row_unit == 0:
            # ---------------- Preferred path: flatten to (B*C, N_pad). ----------------
            if row_unit * N_pad * itemsize <= target:
                TN = N_pad                               # full span: contiguous DMAs
            else:
                cap_tn = max(128, (target // (row_unit * itemsize)) // 128 * 128)
                TN = _choose_tile(N_pad, 128, cap_tn)
            cap_rows = max(row_unit,
                           (target // (TN * itemsize)) // row_unit * row_unit)
            RB = _choose_tile(R, row_unit, cap_rows)
            # Keep >= 2 grid steps if possible so v7x's 2 TensorCores both work.
            if (N_pad // TN) * (R // RB) < 2 and R // row_unit >= 2:
                RB = _choose_tile(R, row_unit, max(row_unit, R // 2))

            pe_blk = self._pe_block(N, N_pad, dt, RB)             # (RB, N_pad), cached
            xr = xr3.reshape((R, N))
            if pad:
                xr = jnp.pad(xr, ((0, 0), (0, pad)))
            grid = (N_pad // TN, R // RB)                 # rows innermost:
                                                          # pe block index constant
            out = pl.pallas_call(
                _pe_add_kernel,
                out_shape=jax.ShapeDtypeStruct((R, N_pad), dt),
                grid=grid,
                in_specs=[
                    pl.BlockSpec((RB, TN), lambda j, i: (i, j)),  # x tile
                    pl.BlockSpec((RB, TN), lambda j, i: (0, j)),  # pe tile (reused)
                ],
                out_specs=pl.BlockSpec((RB, TN), lambda j, i: (i, j)),
                compiler_params=cparams,
                cost_estimate=pl.CostEstimate(
                    flops=R * N_pad, transcendentals=0,
                    bytes_accessed=(2 * R + RB) * N_pad * itemsize),
            )(xr, pe_blk)
            if pad:
                out = out[:, :N]
            return out.reshape(old_shape)

        # ------------- Fallback path: (B, C, N_pad), batch-blocked tiles. -------------
        if C * N_pad * itemsize <= target:
            TN = N_pad
        else:
            cap_tn = max(128, (target // (C * itemsize)) // 128 * 128)
            TN = _choose_tile(N_pad, 128, cap_tn)
        cap_bb = max(1, target // (C * TN * itemsize))
        BB = _choose_tile(B, 1, cap_bb)
        if (N_pad // TN) * (B // BB) < 2 and B >= 2:
            BB = _choose_tile(B, 1, max(1, B // 2))

        pe_n = self._pe_block(N, N_pad, dt, C)                    # (C, N_pad), cached
        xp = xr3 if pad == 0 else jnp.pad(xr3, ((0, 0), (0, 0), (0, pad)))
        grid = (N_pad // TN, B // BB)                     # batch innermost:
                                                          # pe block index constant
        out = pl.pallas_call(
            _pe_add_kernel,
            out_shape=jax.ShapeDtypeStruct((B, C, N_pad), dt),
            grid=grid,
            in_specs=[
                pl.BlockSpec((BB, C, TN), lambda j, b: (b, 0, j)),  # x tile
                pl.BlockSpec((C, TN), lambda j, b: (0, j)),         # pe tile (reused)
            ],
            out_specs=pl.BlockSpec((BB, C, TN), lambda j, b: (b, 0, j)),
            compiler_params=cparams,
            cost_estimate=pl.CostEstimate(
                flops=B * C * N_pad, transcendentals=0,
                bytes_accessed=(2 * B * C + C) * N_pad * itemsize),
        )(xp, pe_n)
        if pad:
            out = out[..., :N]
        return out.reshape(old_shape)


if __name__ == "__main__":
    key = jax.random.PRNGKey(0)

    d_model = 4
    module = TemporalPositionalEncoding(d_model, dropout=0.1, max_len=5000)

    def ref_forward(x):
        B, C = x.shape[0], x.shape[1]
        N = int(np.prod(x.shape[2:]))
        return (x.reshape(B, C, N) + module.pe[:, :N][None]).reshape(x.shape)

    # 1) Main case: preferred flattened path (B*C sublane-divisible, N % 128 == 0).
    x1 = jax.random.normal(key, (2, 4, 16, 16), dtype=jnp.float32)
    y1 = module(x1)
    jax.block_until_ready(y1)
    np.testing.assert_allclose(np.asarray(y1), np.asarray(ref_forward(x1)),
                               rtol=1e-6, atol=1e-6)

    # 2) Fallback batch-blocked path (B*C = 12 not a multiple of 8).
    x2 = jax.random.normal(jax.random.PRNGKey(1), (3, 4, 16, 16), dtype=jnp.float32)
    y2 = module(x2)
    jax.block_until_ready(y2)
    np.testing.assert_allclose(np.asarray(y2), np.asarray(ref_forward(x2)),
                               rtol=1e-6, atol=1e-6)

    # 3) Ragged N (10*10 = 100 -> padded to 128 lanes, then sliced back).
    x3 = jax.random.normal(jax.random.PRNGKey(2), (2, 4, 10, 10), dtype=jnp.float32)
    y3 = module(x3)
    jax.block_until_ready(y3)
    np.testing.assert_allclose(np.asarray(y3), np.asarray(ref_forward(x3)),
                               rtol=1e-6, atol=1e-6)

    print("KERNEL_OK")
</pallas_src>

<mosaic_0001>
module attributes {stable_mosaic.version = 11 : i64} {
  func.func @_pe_add_kernel(%arg0: i32, %arg1: i32, %arg2: memref<8x256xf32, #tpu.memory_space<vmem>>, %arg3: memref<8x256xf32, #tpu.memory_space<vmem>>, %arg4: memref<8x256xf32, #tpu.memory_space<vmem>>) attributes {dimension_semantics = [#tpu.dimension_semantics<parallel>, #tpu.dimension_semantics<parallel>], iteration_bounds = array<i64: 1, 1>, scalar_prefetch = 0 : i64, scratch_operands = 0 : i64, tpu.core_type = #tpu.core_type<tc>, window_params = [{transform_indices = @transform_0, window_bounds = array<i64: 8, 256>}, {transform_indices = @transform_1, window_bounds = array<i64: 8, 256>}, {transform_indices = @transform_2, window_bounds = array<i64: 8, 256>}]} {
    %c0 = arith.constant 0 : index
    %c0_0 = arith.constant 0 : index
    %0 = vector.load %arg2[%c0, %c0_0] : memref<8x256xf32, #tpu.memory_space<vmem>>, vector<8x256xf32>
    %c0_1 = arith.constant 0 : index
    %c0_2 = arith.constant 0 : index
    %1 = vector.load %arg3[%c0_1, %c0_2] : memref<8x256xf32, #tpu.memory_space<vmem>>, vector<8x256xf32>
    %2 = arith.addf %0, %1 : vector<8x256xf32>
    %c0_3 = arith.constant 0 : index
    %c0_4 = arith.constant 0 : index
    %3 = vector.load %arg4[%c0_3, %c0_4] : memref<8x256xf32, #tpu.memory_space<vmem>>, vector<8x256xf32>
    tpu.vector_store %arg4[%c0_3, %c0_4], %2 {strides = array<i32>} : memref<8x256xf32, #tpu.memory_space<vmem>>, vector<8x256xf32>,
    return
  }
  func.func @transform_0(%arg0: i32, %arg1: i32) -> (i32, i32) {
    %c0_i32 = arith.constant 0 : i32
    return %arg1, %arg0 : i32, i32
  }
  func.func @transform_1(%arg0: i32, %arg1: i32) -> (i32, i32) {
    %c0_i32 = arith.constant 0 : i32
    %c0_i32_0 = arith.constant 0 : i32
    return %c0_i32, %arg0 : i32, i32
  }
  func.func @transform_2(%arg0: i32, %arg1: i32) -> (i32, i32) {
    %c0_i32 = arith.constant 0 : i32
    return %arg1, %arg0 : i32, i32
  }
}

</mosaic_0001>

<bundles_post_ra>
// kernel: tpu_custom_call.1
= control target key start
LH: loop header
LB: loop body
LE: loop exit
PB: predicated region body
PF: predicated region fallthrough
CT: control target
= control target key end

     0   :  { %7 = vsyncpa [#allocation3], 0  ;;  %s156_s0 = inlined_call_operand.hbm [shape: f32[8,256], index: 0, kind: input, shape index: {}]   ;;  %s157_s1 = inlined_call_operand.hbm [shape: f32[8,256], index: 1, kind: input, shape index: {}]   ;;  %s158_s2 = inlined_call_operand.hbm [shape: f32[8,256], index: 2, kind: output, shape index: {}]  }
   0x1   :  { %8 = vsyncpa [#allocation6], 0 }
   0x2   :  { %9 = vsyncpa [#allocation4], 0  ;;  %s129_s9 = smov [#allocation2]   ;;  %s130_s11 = smov [#allocation5]  }
   0x3   :  { %s16_s10 = sshll.u32 %s129_s9, 4  ;;  %s26_s12 = sshll.u32 %s130_s11, 4  ;;  %s17_s10 = int_to_ptr.vmem [resolvable:$true] %s16_s10  ;;  %s27_s12 = int_to_ptr.vmem [resolvable:$true] %s26_s12 }
   0x4   :  { %s71_s13 = scalar_lea.vmem %s17_s10, 256  ;;  %p76_p1 = scmp.lt.s32.totalorder %s17_s10, %s17_s10 }
   0x5   :  { %p72_p0 = scmp.ne.s32.totalorder %s17_s10, %s71_s13  ;;  %p77_p2 = scmp.lt.s32.totalorder %s71_s13, %s71_s13 }
   0x7   :  { %p78_p3 = por %p77_p2, %p76_p1 }
   0x9   :  { %p79_p4 = pnand %p78_p3, %p72_p0 }
   0xb   :  { %82 = shalt.err (!%p79_p4)
}
   0xc   :  { %19 = dma.hbm_to_vmem [thread:$0]  %s156_s0, 256, %s17_s10, [#allocation3]  }
   0xd   :  { %s91_s16 = scalar_lea.vmem %s27_s12, 256  ;;  %p96_p6 = scmp.lt.s32.totalorder %s27_s12, %s27_s12 }
   0xe   :  { %p92_p5 = scmp.ne.s32.totalorder %s27_s12, %s91_s16  ;;  %p97_p7 = scmp.lt.s32.totalorder %s91_s16, %s91_s16 }
  0x10   :  { %p98_p8 = por %p97_p7, %p96_p6 }
  0x12   :  { %p99_p9 = pnand %p98_p8, %p92_p5 }
  0x14   :  { %102 = shalt.err (!%p99_p9)
}
  0x15   :  { %29 = dma.hbm_to_vmem [thread:$0]  %s157_s1, 256, %s27_s12, [#allocation6]  }
  0x16   :  { %123 = dma.done.wait [#allocation3], 256  }
  0x17   :  { %124 = vsyncadd [#allocation3], 4294967040 }
  0x18   :  { %125 = dma.done.wait [#allocation6], 256  }
  0x19   :  { %126 = vsyncadd [#allocation6], 4294967040  ;;  %s131_s19 = smov [#allocation7]   ;;  %v36_v0 = vld [vmem:[#allocation2] sm:$0xff]  ;;  %v38_v1 = vld [vmem:[#allocation5] sm:$0xff] }
  0x1a   :  { %s50_s20 = sshll.u32 %s131_s19, 4  ;;  %v37_v2 = vld [vmem:[#allocation2 + $0x8] sm:$0xff]  ;;  %v40_v3 = vadd.f32 %v38_v1, %v36_v0  ;;  %v39_v4 = vld [vmem:[#allocation5 + $0x8] sm:$0xff]  ;;  %s51_s20 = int_to_ptr.vmem [resolvable:$true] %s50_s20 }
  0x1b   :  { %v41_v5 = vadd.f32 %v39_v4, %v37_v2  ;;  %s103_s0 = scalar_lea.vmem %s51_s20, 256  ;;  %p108_p11 = scmp.lt.s32.totalorder %s51_s20, %s51_s20 }
  0x1c   :  { %42 = vst [vmem:[#allocation7] sm:$0xff] %v40_v3  ;;  %p104_p10 = scmp.ne.s32.totalorder %s51_s20, %s103_s0  ;;  %p109_p12 = scmp.lt.s32.totalorder %s103_s0, %s103_s0 }
  0x1d   :  { %43 = vst [vmem:[#allocation7 + $0x8] sm:$0xff] %v41_v5 }
  0x1e   :  { %p110_p13 = por %p109_p12, %p108_p11 }
  0x20   :  { %p111_p0 = pnand %p110_p13, %p104_p10 }
  0x22   :  { %114 = shalt.err (!%p111_p0)
}
  0x23   :  { %53 = dma.vmem_to_hbm [thread:$0]  %s51_s20, 256, %s158_s2, [#allocation4]  }
  0x24   :  { %127 = dma.done.wait [#allocation4], 256  }
  0x25   :  { %128 = vsyncadd [#allocation4], 4294967040 }
  0x26   :  { %57 = vsyncpa [#allocation3], 1 }
  0x27   :  { %58 = vsyncpa [#allocation6], 1 }
  0x28   :  { %59 = vsyncpa [#allocation4], 1 }

</bundles_post_ra>
